<compile_context>
chip_gen: v6e
topology: v6e:2x2x1
jax: 0.10.0
libtpu: 0.0.40
codegen_flags: <defaults>
</compile_context>

<pallas_src>
import functools

import jax
import jax.numpy as jnp
from jax.experimental import pallas as pl
from jax.experimental.pallas import tpu as pltpu


def bert_self_output_kernel(x_ref, res_ref, wt_ref, b_ref, g_ref, beta_ref,
                            o_ref, *, eps, n_sub):
    # x_ref:    (tm, H)  hidden_states tile (native dtype, e.g. bf16/f32)
    # res_ref:  (tm, H)  input_tensor (residual) tile
    # wt_ref:   (H, H)   dense weight, (in, out) layout -- resident, 1-buffered
    # b_ref:    (1, H)   dense bias       (f32)
    # g_ref:    (1, H)   LayerNorm gamma  (f32)
    # beta_ref: (1, H)   LayerNorm beta   (f32)
    # o_ref:    (tm, H)  output tile
    tm, H = x_ref.shape
    sub = tm // n_sub
    inv_h = 1.0 / H

    wt = wt_ref[...]          # hoisted: loaded once per grid step
    b = b_ref[...]
    g = g_ref[...]
    bt = beta_ref[...]

    # Static unrolled sub-chunk loop: LN epilogue of chunk j overlaps with the
    # MXU matmul of chunk j+1 (independent work for the LLO scheduler).
    for j in range(n_sub):
        r0 = j * sub
        x = x_ref[pl.ds(r0, sub), :]
        res = res_ref[pl.ds(r0, sub), :]

        # Dense: (sub, H) @ (H, H) on the MXU, f32 accumulation, no transpose.
        y = jnp.dot(x, wt, preferred_element_type=jnp.float32)

        # TODO(synk): Dropout(p=0.3) is identity at inference; a training-mode
        # pltpu.prng_random_bits mask + 1/(1-p) scaling is not implemented.

        # Merged bias + residual add.
        y = y + (res.astype(jnp.float32) + b)

        # LayerNorm over the hidden dim -- two-pass (numerically stable) stats.
        mean = jnp.sum(y, axis=-1, keepdims=True) * inv_h
        d = y - mean
        var = jnp.sum(d * d, axis=-1, keepdims=True) * inv_h
        inv = jax.lax.rsqrt(var + eps)

        o_ref[pl.ds(r0, sub), :] = (d * inv * g + bt).astype(o_ref.dtype)


def _round_up(x, m):
    return ((x + m - 1) // m) * m


def _spec(shape, index_map, buffers=None):
    """BlockSpec with optional non-default pipelining depth (safe fallback)."""
    if buffers is None or buffers == 2 or not hasattr(pl, "Buffered"):
        return pl.BlockSpec(shape, index_map)
    try:
        return pl.BlockSpec(shape, index_map, pipeline_mode=pl.Buffered(buffers))
    except TypeError:
        return pl.BlockSpec(shape, index_map)


def _pick_tiling(rows, H, itemsize):
    """Generation-aware (tile_rows, vmem_limit_bytes, input_buffer_depth)."""
    kind = ""
    try:
        kind = jax.devices()[0].device_kind.lower()
    except Exception:
        pass

    if "v7" in kind or "7x" in kind:
        vmem_budget = 40 * 1024 * 1024      # 64 MiB physical per TC
        granule = 256                       # 2x256x256 MXU
        multi_core = True
        input_buffers = 2
    elif "v6" in kind:
        vmem_budget = 64 * 1024 * 1024      # 128 MiB physical
        granule = 256
        multi_core = False
        input_buffers = 3                   # HBM-bound: deeper x/res buffering
    elif "v5" in kind or "v4" in kind:
        vmem_budget = 64 * 1024 * 1024
        granule = 128                       # 4x128x128 MXU (v5e)
        multi_core = False
        input_buffers = 2
    else:
        vmem_budget = None                  # unknown chip: don't force a limit
        granule = 128
        multi_core = False
        input_buffers = 2

    budget = vmem_budget if vmem_budget is not None else 32 * 1024 * 1024

    # Resident, single-buffered weight + the three f32 constant vectors.
    const_bytes = H * H * itemsize + 3 * H * 4
    headroom = 4 * 1024 * 1024
    # Per-row VMEM: x/res (input_buffers deep) + out (2 deep) at native dtype,
    # plus ~4 H-wide f32 intermediates (y, centered, squared, store temp).
    per_row = (2 * input_buffers + 2) * H * itemsize + 4 * H * 4

    avail = max(budget - const_bytes - headroom, per_row * granule)
    max_tile = 512 if itemsize >= 4 else 1024   # f32 tiles cost 2x VMEM
    tile_rows = min(max_tile, max(granule, (avail // per_row) // granule * granule))
    tile_rows = min(tile_rows, _round_up(rows, 8))
    if multi_core and rows > 8:
        # Ensure the 1-D grid has >= 2 steps so both v7x TensorCores get work.
        tile_rows = min(tile_rows, max(8, _round_up(pl.cdiv(rows, 2), 8)))
    return int(tile_rows), vmem_budget, input_buffers


def bert_self_output(hidden_states, input_tensor, w, b, gamma, beta,
                     *, eps=1e-12, tile_rows=None, vmem_limit_bytes=None,
                     mxu_dtype=None):
    """hidden_states / input_tensor: (B, S, H); w: (H, H) PyTorch Linear weight
    in (out, in) layout; b / gamma / beta: (H,)."""
    B, S, H = hidden_states.shape
    rows = B * S
    itemsize = jnp.dtype(hidden_states.dtype).itemsize

    picked_tile, picked_vmem, input_buffers = _pick_tiling(rows, H, itemsize)
    if tile_rows is None:
        tile_rows = picked_tile
    if vmem_limit_bytes is None:
        vmem_limit_bytes = picked_vmem

    x2 = hidden_states.reshape(rows, H)
    r2 = input_tensor.reshape(rows, H)

    # One-time (in, out)-layout weight so the in-kernel dot needs no per-step
    # transpose (in production, store the weight pre-transposed once).
    wt = jnp.transpose(w)
    if mxu_dtype is not None:
        # Optional: force bf16 MXU operands (f32 LN epilogue unchanged).
        x2 = x2.astype(mxu_dtype)
        wt = wt.astype(mxu_dtype)
    else:
        wt = wt.astype(hidden_states.dtype)

    # Small vectors stay f32 end-to-end.
    b2 = b.reshape(1, H).astype(jnp.float32)
    g2 = gamma.reshape(1, H).astype(jnp.float32)
    bt2 = beta.reshape(1, H).astype(jnp.float32)

    # No wrapper-side padding: ragged last block is masked by Pallas.
    grid = (pl.cdiv(rows, tile_rows),)

    # Sub-chunking for MXU / LN-epilogue overlap (each sub-chunk 8-row aligned).
    if tile_rows >= 128 and tile_rows % 32 == 0:
        n_sub = 4
    elif tile_rows >= 32 and tile_rows % 16 == 0:
        n_sub = 2
    else:
        n_sub = 1

    kernel = functools.partial(bert_self_output_kernel, eps=eps, n_sub=n_sub)

    out = pl.pallas_call(
        kernel,
        out_shape=jax.ShapeDtypeStruct((rows, H), hidden_states.dtype),
        grid_spec=pl.GridSpec(
            grid=grid,
            in_specs=[
                _spec((tile_rows, H), lambda i: (i, 0), input_buffers),  # x
                _spec((tile_rows, H), lambda i: (i, 0), input_buffers),  # residual
                _spec((H, H), lambda i: (0, 0), 1),                      # weight
                _spec((1, H), lambda i: (0, 0), 1),                      # bias
                _spec((1, H), lambda i: (0, 0), 1),                      # gamma
                _spec((1, H), lambda i: (0, 0), 1),                      # beta
            ],
            out_specs=pl.BlockSpec((tile_rows, H), lambda i: (i, 0)),
        ),
        compiler_params=pltpu.CompilerParams(
            dimension_semantics=("parallel",),
            vmem_limit_bytes=vmem_limit_bytes),
    )(x2, r2, wt, b2, g2, bt2)

    return out.reshape(B, S, H)


def reference(hidden_states, input_tensor, w, b, gamma, beta, eps=1e-12):
    hs = hidden_states.astype(jnp.float32)
    res = input_tensor.astype(jnp.float32)
    y = jnp.einsum("bsh,oh->bso", hs, w.astype(jnp.float32)) + b.astype(jnp.float32)
    y = y + res
    mean = jnp.mean(y, axis=-1, keepdims=True)
    var = jnp.mean((y - mean) ** 2, axis=-1, keepdims=True)
    return ((y - mean) / jnp.sqrt(var + eps) * gamma.astype(jnp.float32)
            + beta.astype(jnp.float32))


if __name__ == "__main__":
    B, S, H = 2, 8, 32
    key = jax.random.PRNGKey(0)
    k1, k2, k3, k4 = jax.random.split(key, 4)

    hidden_states = jax.random.normal(k1, (B, S, H), dtype=jnp.float32)
    input_tensor = jax.random.normal(k2, (B, S, H), dtype=jnp.float32)

    # nn.Linear-like uniform init, LayerNorm ones/zeros.
    bound = 1.0 / (H ** 0.5)
    w = jax.random.uniform(k3, (H, H), minval=-bound, maxval=bound,
                           dtype=jnp.float32)                 # (out, in)
    b = jax.random.uniform(k4, (H,), minval=-bound, maxval=bound,
                           dtype=jnp.float32)
    gamma = jnp.ones((H,), jnp.float32)
    beta = jnp.zeros((H,), jnp.float32)

    # f32 check.
    out = jax.block_until_ready(
        bert_self_output(hidden_states, input_tensor, w, b, gamma, beta))
    ref = reference(hidden_states, input_tensor, w, b, gamma, beta)
    assert out.shape == (B, S, H)
    assert jnp.allclose(out, ref, atol=1e-4, rtol=1e-4), "f32 mismatch vs reference"

    # bf16 activations / weight, f32 bias + LayerNorm params end-to-end.
    hs_bf = hidden_states.astype(jnp.bfloat16)
    res_bf = input_tensor.astype(jnp.bfloat16)
    w_bf = w.astype(jnp.bfloat16)
    out_bf = jax.block_until_ready(
        bert_self_output(hs_bf, res_bf, w_bf, b, gamma, beta))
    ref_bf = reference(hs_bf, res_bf, w_bf, b, gamma, beta)
    assert jnp.allclose(out_bf.astype(jnp.float32), ref_bf,
                        atol=2e-2, rtol=2e-2), "bf16 mismatch vs reference"

    # Ragged-tail path: rows (=18) not divisible by tile_rows (=8), no padding.
    S2 = 9
    hs2 = jax.random.normal(k1, (B, S2, H), dtype=jnp.float32)
    in2 = jax.random.normal(k2, (B, S2, H), dtype=jnp.float32)
    out2 = jax.block_until_ready(
        bert_self_output(hs2, in2, w, b, gamma, beta, tile_rows=8))
    ref2 = reference(hs2, in2, w, b, gamma, beta)
    assert out2.shape == (B, S2, H)
    assert jnp.allclose(out2, ref2, atol=1e-4, rtol=1e-4), "ragged-tail mismatch"

    print("KERNEL_OK")
</pallas_src>

<mosaic_0001>
module attributes {stable_mosaic.version = 11 : i64} {
  func.func @bert_self_output_kernel(%arg0: i32, %arg1: memref<16x32xf32, #tpu.memory_space<vmem>>, %arg2: memref<16x32xf32, #tpu.memory_space<vmem>>, %arg3: memref<32x32xf32, #tpu.memory_space<vmem>>, %arg4: memref<1x32xf32, #tpu.memory_space<vmem>>, %arg5: memref<1x32xf32, #tpu.memory_space<vmem>>, %arg6: memref<1x32xf32, #tpu.memory_space<vmem>>, %arg7: memref<16x32xf32, #tpu.memory_space<vmem>>) attributes {dimension_semantics = [#tpu.dimension_semantics<parallel>], iteration_bounds = array<i64: 1>, scalar_prefetch = 0 : i64, scratch_operands = 0 : i64, tpu.core_type = #tpu.core_type<tc>, window_params = [{transform_indices = @transform_0, window_bounds = array<i64: 16, 32>}, {transform_indices = @transform_1, window_bounds = array<i64: 16, 32>}, {pipeline_mode = #tpu.pipeline_mode<synchronous>, transform_indices = @transform_2, window_bounds = array<i64: 32, 32>}, {pipeline_mode = #tpu.pipeline_mode<synchronous>, transform_indices = @transform_3, window_bounds = array<i64: 1, 32>}, {pipeline_mode = #tpu.pipeline_mode<synchronous>, transform_indices = @transform_4, window_bounds = array<i64: 1, 32>}, {pipeline_mode = #tpu.pipeline_mode<synchronous>, transform_indices = @transform_5, window_bounds = array<i64: 1, 32>}, {transform_indices = @transform_6, window_bounds = array<i64: 16, 32>}]} {
    %c0 = arith.constant 0 : index
    %c0_0 = arith.constant 0 : index
    %0 = vector.load %arg3[%c0, %c0_0] : memref<32x32xf32, #tpu.memory_space<vmem>>, vector<32x32xf32>
    %c0_1 = arith.constant 0 : index
    %c0_2 = arith.constant 0 : index
    %1 = vector.load %arg4[%c0_1, %c0_2] : memref<1x32xf32, #tpu.memory_space<vmem>>, vector<1x32xf32>
    %c0_3 = arith.constant 0 : index
    %c0_4 = arith.constant 0 : index
    %2 = vector.load %arg5[%c0_3, %c0_4] : memref<1x32xf32, #tpu.memory_space<vmem>>, vector<1x32xf32>
    %c0_5 = arith.constant 0 : index
    %c0_6 = arith.constant 0 : index
    %3 = vector.load %arg6[%c0_5, %c0_6] : memref<1x32xf32, #tpu.memory_space<vmem>>, vector<1x32xf32>
    %c0_7 = arith.constant 0 : index
    %c0_8 = arith.constant 0 : index
    %4 = vector.load %arg1[%c0_7, %c0_8] : memref<16x32xf32, #tpu.memory_space<vmem>>, vector<16x32xf32>
    %c0_9 = arith.constant 0 : index
    %c0_10 = arith.constant 0 : index
    %5 = vector.load %arg2[%c0_9, %c0_10] : memref<16x32xf32, #tpu.memory_space<vmem>>, vector<16x32xf32>
    %cst = arith.constant dense<0.000000e+00> : vector<16x32xf32>
    %6 = tpu.matmul %4, %0, %cst {dimension_numbers = #tpu.dot_dimension_numbers<[1], [0], [0], [1], [0, 0, 1, 1], [], []>} : vector<16x32xf32>, vector<32x32xf32>, vector<16x32xf32> -> vector<16x32xf32>
    %7 = vector.broadcast %1 : vector<1x32xf32> to vector<16x32xf32>
    %8 = arith.addf %5, %7 : vector<16x32xf32>
    %9 = arith.addf %6, %8 : vector<16x32xf32>
    %cst_11 = arith.constant dense<0.000000e+00> : vector<16xf32>
    %10 = vector.multi_reduction <add>, %9, %cst_11 [1] : vector<16x32xf32> to vector<16xf32>
    %11 = vector.shape_cast %10 : vector<16xf32> to vector<16x1xf32>
    %cst_12 = arith.constant 3.125000e-02 : f32
    %12 = vector.broadcast %cst_12 : f32 to vector<16x1xf32>
    %13 = arith.mulf %11, %12 : vector<16x1xf32>
    %14 = vector.broadcast %13 : vector<16x1xf32> to vector<16x32xf32>
    %15 = arith.subf %9, %14 : vector<16x32xf32>
    %16 = arith.mulf %15, %15 : vector<16x32xf32>
    %cst_13 = arith.constant dense<0.000000e+00> : vector<16xf32>
    %17 = vector.multi_reduction <add>, %16, %cst_13 [1] : vector<16x32xf32> to vector<16xf32>
    %18 = vector.shape_cast %17 : vector<16xf32> to vector<16x1xf32>
    %cst_14 = arith.constant 3.125000e-02 : f32
    %19 = vector.broadcast %cst_14 : f32 to vector<16x1xf32>
    %20 = arith.mulf %18, %19 : vector<16x1xf32>
    %cst_15 = arith.constant 9.99999996E-13 : f32
    %21 = vector.broadcast %cst_15 : f32 to vector<16x1xf32>
    %22 = arith.addf %20, %21 : vector<16x1xf32>
    %23 = math.rsqrt %22 : vector<16x1xf32>
    %24 = vector.broadcast %23 : vector<16x1xf32> to vector<16x32xf32>
    %25 = arith.mulf %15, %24 : vector<16x32xf32>
    %26 = vector.broadcast %2 : vector<1x32xf32> to vector<16x32xf32>
    %27 = arith.mulf %25, %26 : vector<16x32xf32>
    %28 = vector.broadcast %3 : vector<1x32xf32> to vector<16x32xf32>
    %29 = arith.addf %27, %28 : vector<16x32xf32>
    %c0_16 = arith.constant 0 : index
    %c0_17 = arith.constant 0 : index
    %30 = vector.load %arg7[%c0_16, %c0_17] : memref<16x32xf32, #tpu.memory_space<vmem>>, vector<16x32xf32>
    tpu.vector_store %arg7[%c0_16, %c0_17], %29 {strides = array<i32>} : memref<16x32xf32, #tpu.memory_space<vmem>>, vector<16x32xf32>,
    return
  }
  func.func @transform_0(%arg0: i32) -> (i32, i32) {
    %c0_i32 = arith.constant 0 : i32
    %c0_i32_0 = arith.constant 0 : i32
    return %arg0, %c0_i32 : i32, i32
  }
  func.func @transform_1(%arg0: i32) -> (i32, i32) {
    %c0_i32 = arith.constant 0 : i32
    %c0_i32_0 = arith.constant 0 : i32
    return %arg0, %c0_i32 : i32, i32
  }
  func.func @transform_2(%arg0: i32) -> (i32, i32) {
    %c0_i32 = arith.constant 0 : i32
    %c0_i32_0 = arith.constant 0 : i32
    %c0_i32_1 = arith.constant 0 : i32
    return %c0_i32, %c0_i32_0 : i32, i32
  }
  func.func @transform_3(%arg0: i32) -> (i32, i32) {
    %c0_i32 = arith.constant 0 : i32
    %c0_i32_0 = arith.constant 0 : i32
    %c0_i32_1 = arith.constant 0 : i32
    return %c0_i32, %c0_i32_0 : i32, i32
  }
  func.func @transform_4(%arg0: i32) -> (i32, i32) {
    %c0_i32 = arith.constant 0 : i32
    %c0_i32_0 = arith.constant 0 : i32
    %c0_i32_1 = arith.constant 0 : i32
    return %c0_i32, %c0_i32_0 : i32, i32
  }
  func.func @transform_5(%arg0: i32) -> (i32, i32) {
    %c0_i32 = arith.constant 0 : i32
    %c0_i32_0 = arith.constant 0 : i32
    %c0_i32_1 = arith.constant 0 : i32
    return %c0_i32, %c0_i32_0 : i32, i32
  }
  func.func @transform_6(%arg0: i32) -> (i32, i32) {
    %c0_i32 = arith.constant 0 : i32
    %c0_i32_0 = arith.constant 0 : i32
    return %arg0, %c0_i32 : i32, i32
  }
}

</mosaic_0001>

<bundles_post_ra>
// kernel: tpu_custom_call.1
= control target key start
LH: loop header
LB: loop body
LE: loop exit
PB: predicated region body
PF: predicated region fallthrough
CT: control target
= control target key end

     0   :  { %11 = vsyncpa [#allocation3], 0  ;;  %s428_s0 = inlined_call_operand.hbm [shape: f32[16,32], index: 0, kind: input, shape index: {}]   ;;  %s429_s1 = inlined_call_operand.hbm [shape: f32[16,32], index: 1, kind: input, shape index: {}]   ;;  %s430_s2 = inlined_call_operand.hbm [shape: f32[32,32], index: 2, kind: input, shape index: {}]   ;;  %s431_s3 = inlined_call_operand.vmem [shape: f32[1,32], index: 3, kind: input, shape index: {}]   ;;  %s432_s4 = inlined_call_operand.vmem [shape: f32[1,32], index: 4, kind: input, shape index: {}]   ;;  %s433_s5 = inlined_call_operand.vmem [shape: f32[1,32], index: 5, kind: input, shape index: {}]   ;;  %s434_s6 = inlined_call_operand.hbm [shape: f32[16,32], index: 6, kind: output, shape index: {}]  }
   0x1   :  { %12 = vsyncpa [#allocation6], 0 }
   0x2   :  { %13 = vsyncpa [#allocation4], 0  ;;  %s346_s21 = smov [#allocation5]   ;;  %s347_s23 = smov [#allocation2]  }
   0x3   :  { %s31_s22 = sshll.u32 %s346_s21, 4  ;;  %s19_s24 = sshll.u32 %s347_s23, 4  ;;  %s32_s22 = int_to_ptr.vmem [resolvable:$true] %s31_s22  ;;  %s20_s24 = int_to_ptr.vmem [resolvable:$true] %s19_s24 }
   0x4   :  { %s268_s25 = scalar_lea.vmem %s32_s22, 256  ;;  %p273_p1 = scmp.lt.s32.totalorder %s32_s22, %s32_s22 }
   0x5   :  { %p269_p0 = scmp.ne.s32.totalorder %s32_s22, %s268_s25  ;;  %p274_p2 = scmp.lt.s32.totalorder %s268_s25, %s268_s25 }
   0x7   :  { %p275_p3 = por %p274_p2, %p273_p1 }
   0x9   :  { %p276_p4 = pnand %p275_p3, %p269_p0 }
   0xb   :  { %279 = shalt.err (!%p276_p4)
}
   0xc   :  { %s348_s26 = smov 128   ;;  %s349_s27 = smov 8  }
   0xd   :  { %37 = dma.hbm_to_vmem [thread:$0]  %s429_s1, 256, %s32_s22, [#allocation6], %s348_s26, %s348_s26, %s349_s27  }
   0xe   :  { %s288_s30 = scalar_lea.vmem %s20_s24, 256  ;;  %p293_p6 = scmp.lt.s32.totalorder %s20_s24, %s20_s24 }
   0xf   :  { %p289_p5 = scmp.ne.s32.totalorder %s20_s24, %s288_s30  ;;  %p294_p7 = scmp.lt.s32.totalorder %s288_s30, %s288_s30 }
  0x11   :  { %p295_p8 = por %p294_p7, %p293_p6 }
  0x13   :  { %p296_p9 = pnand %p295_p8, %p289_p5 }
  0x15   :  { %299 = shalt.err (!%p296_p9)
}
  0x16   :  { %25 = dma.hbm_to_vmem [thread:$0]  %s428_s0, 256, %s20_s24, [#allocation3], %s348_s26, %s348_s26, %s349_s27  }
  0x17   :  { %s350_s9 = smov [#allocation7]  }
  0x18   :  { %s43_s10 = sshll.u32 %s350_s9, 4  ;;  %s44_s10 = int_to_ptr.vmem [resolvable:$true] %s43_s10 }
  0x19   :  { %s308_s11 = scalar_lea.vmem %s44_s10, 512  ;;  %p313_p11 = scmp.lt.s32.totalorder %s44_s10, %s44_s10 }
  0x1a   :  { %p309_p10 = scmp.ne.s32.totalorder %s44_s10, %s308_s11  ;;  %p314_p12 = scmp.lt.s32.totalorder %s308_s11, %s308_s11 }
  0x1c   :  { %p315_p13 = por %p314_p12, %p313_p11 }
  0x1e   :  { %p316_p0 = pnand %p315_p13, %p309_p10 }
  0x20   :  { %319 = shalt.err (!%p316_p0)
}
  0x21   :  { %49 = dma.hbm_to_vmem [thread:$0]  %s430_s2, 512, %s44_s10, [#allocation6], %s348_s26, %s348_s26, %s349_s27  }
  0x22   :  { %340 = dma.done.wait [#allocation3], 256  }
  0x23   :  { %341 = vsyncadd [#allocation3], 4294967040 }
  0x24   :  { %342 = dma.done.wait [#allocation6], 768  }
  0x25   :  { %343 = vsyncadd [#allocation6], 4294966528  ;;  %vm84_vm0 = vcmask 261120   ;;  %v68_v0 = vld [vmem:[#allocation7 + $0x18] sm:$0xff]  ;;  %v67_v1 = vld [vmem:[#allocation7 + $0x10] sm:$0xff]  ;;  %s351_s16 = smov [#allocation8]  }
  0x26   :  { %239 = vmatprep.subr.mxu0 %v68_v0  ;;  %v72_v2 = vld [vmem:[#allocation2] sm:$0xff]  ;;  %v66_v3 = vld [vmem:[#allocation7 + $0x8] sm:$0xff]  ;;  %v74_v6 = vld [vmem:[#allocation5] sm:$0xff]  ;;  %s215_s17 = sshll.u32 %s351_s16, 4  ;;  %s216_s17 = int_to_ptr.vmem [resolvable:$true] %s215_s17 }
  0x27   :  { %240 = vmatpush3.msra.mxu0 %v68_v0  ;;  %247 = vmatprep.mubr.msk.f32.mxu0 %vm84_vm0, %v72_v2  ;;  %v65_v4 = vld [vmem:[#allocation7] sm:$0xff]  ;;  %v73_v5 = vld [vmem:[#allocation2 + $0x8] sm:$0xff]  ;;  %v75_v8 = vld [vmem:[#allocation5 + $0x8] sm:$0xff]  ;;  %s320_s18 = scalar_lea.vmem %s216_s17, 256  ;;  %p325_p2 = scmp.lt.s32.totalorder %s216_s17, %s216_s17 }
  0x28   :  { %241 = vmatprep.subr.mxu0 %v67_v1  ;;  %v228_v7 = vld [vmem:[%s431_s3] ss:$0 sm:$0xff]  ;;  %p321_p1 = scmp.ne.s32.totalorder %s216_s17, %s320_s18  ;;  %p326_p3 = scmp.lt.s32.totalorder %s320_s18, %s320_s18 }
  0x29   :  { %242 = vmatpush3.msra.mxu0 %v67_v1  ;;  %v82_v9 = vadd.f32 %v228_v7, %v74_v6  ;;  %v83_v11 = vadd.f32 %v228_v7, %v75_v8  ;;  %v231_v34 = vld [vmem:[%s432_s4] ss:$0 sm:$0xff] }
  0x2a   :  { %243 = vmatprep.subr.mxu0 %v66_v3  ;;  %v232_v36 = vld [vmem:[%s433_s5] ss:$0 sm:$0xff]  ;;  %p327_p4 = por %p326_p3, %p325_p2 }
  0x2b   :  { %244 = vmatpush3.msra.mxu0 %v66_v3 }
  0x2c   :  { %245 = vmatprep.subr.mxu0 %v65_v4  ;;  %p328_p5 = pnand %p327_p4, %p321_p1 }
  0x2d   :  { %246 = vmatpush3.msra.mxu0 %v65_v4 }
  0x2e   :  { %248 = vmatmul.mubr.msk.f32.vlgmr.msra.gmra.mxu0 %vm84_vm0, %v73_v5 }
  0xee   :  { %v249_v10 = vpop.f32.mrf.mxu0 }
  0xef   :  { %v163_v14 = vadd.f32 %v249_v10, %v83_v11 }
  0xf0   :  { %v157_v12 = vpop.f32.mrf.mxu0 }
  0xf1   :  { %v158_v13 = vadd.f32 %v157_v12, %v82_v9  ;;  %v169_v16 = vsel %vm84_vm0, %v163_v14, 0.0 }
  0xf3   :  { %v166_v15 = vsel %vm84_vm0, %v158_v13, 0.0 }
  0xf4   :  { %167 = vadd.xlane.f32.xlu0 %v166_v15 }
  0xf8   :  { %170 = vadd.xlane.f32.xlu0 %v169_v16 }
 0x17d   :  { %v168_v17 = vpop.xlane.xlu0 %167 }
 0x17e   :  { %v172_v18 = vmul.f32 0.03125, %v168_v17 }
 0x180   :  { %v174_v19 = vsub.f32 %v158_v13, %v172_v18 }
 0x181   :  { %v171_v20 = vpop.xlane.xlu0 %170 }
 0x182   :  { %v173_v21 = vmul.f32 0.03125, %v171_v20  ;;  %v176_v22 = vmul.f32 %v174_v19, %v174_v19 }
 0x184   :  { %v175_v23 = vsub.f32 %v163_v14, %v173_v21  ;;  %v178_v24 = vsel %vm84_vm0, %v176_v22, 0.0 }
 0x185   :  { %179 = vadd.xlane.f32.xlu1 %v178_v24 }
 0x186   :  { %v177_v25 = vmul.f32 %v175_v23, %v175_v23 }
 0x188   :  { %v181_v26 = vsel %vm84_vm0, %v177_v25, 0.0 }
 0x189   :  { %182 = vadd.xlane.f32.xlu1 %v181_v26 }
 0x20e   :  { %v180_v27 = vpop.xlane.xlu1 %179 }
 0x20f   :  { %v184_v28 = vmul.f32 0.03125, %v180_v27 }
 0x211   :  { %v186_v29 = vadd.f32 1e-12, %v184_v28 }
 0x212   :  { %v183_v30 = vpop.xlane.xlu1 %182 }
 0x213   :  { %256 = vrsqrt.f32 %v186_v29  ;;  %v185_v31 = vmul.f32 0.03125, %v183_v30 }
 0x215   :  { %v187_v32 = vadd.f32 1e-12, %v185_v31 }
 0x217   :  { %258 = vrsqrt.f32 %v187_v32 }
 0x220   :  { %v257_v33 = vpop.eup %256 }
 0x221   :  { %v190_v35 = vmul.f32 %v257_v33, %v174_v19 }
 0x223   :  { %v198_v37 = vmul.f32 %v231_v34, %v190_v35 }
 0x224   :  { %v259_v38 = vpop.eup %258 }
 0x225   :  { %v191_v39 = vmul.f32 %v259_v38, %v175_v23  ;;  %v206_v40 = vadd.f32 %v232_v36, %v198_v37 }
 0x227   :  { %v199_v41 = vmul.f32 %v231_v34, %v191_v39  ;;  %208 = vst.msk [vmem:[#allocation8] sm:$0xff] %vm84_vm0, %v206_v40 }
 0x229   :  { %v207_v42 = vadd.f32 %v232_v36, %v199_v41 }
 0x22b   :  { %209 = vst.msk [vmem:[#allocation8 + $0x8] sm:$0xff] %vm84_vm0, %v207_v42 }
 0x22c   :  { %331 = shalt.err (!%p328_p5)
}
 0x22d   :  { %221 = dma.vmem_to_hbm [thread:$0]  %s216_s17, 256, %s434_s6, [#allocation4], %s348_s26, %s348_s26, %s349_s27  }
 0x22e   :  { %344 = dma.done.wait [#allocation4], 256  }
 0x22f   :  { %345 = vsyncadd [#allocation4], 4294967040 }
 0x230   :  { %225 = vsyncpa [#allocation3], 1 }
 0x231   :  { %226 = vsyncpa [#allocation6], 1 }
 0x232   :  { %227 = vsyncpa [#allocation4], 1 }

</bundles_post_ra>
